<compile_context>
chip_gen: v5e
topology: v5e:2x2
jax: 0.10.0
libtpu: 0.0.40
codegen_flags: <defaults>
</compile_context>

<pallas_src>
import jax
import jax.numpy as jnp
from jax.experimental import pallas as pl
from jax.experimental.pallas import tpu as pltpu


def _pick_spatial_tile(hw, cap=2048):
    """Largest lane-dense tile (multiple of 128) that divides hw, else hw."""
    if hw % 128 != 0:
        return hw
    t = 128
    while t * 2 <= min(hw, cap) and hw % (t * 2) == 0:
        t *= 2
    return t


# ----------------------------------------------------------------------------
# Kernel 1: fused global-average-pool + FC1/ReLU/FC2/sigmoid -> (B, C, 1) scale
# ----------------------------------------------------------------------------
def _make_pool_fc_kernel(hw_total):
    inv_hw = 1.0 / float(hw_total)

    def kernel(x_ref, w1t_ref, w2_ref, s_ref, acc_ref):
        # x_ref:   (C, T)        current spatial tile of this batch element
        # w1t_ref: (C, C//r)     == W1.T  (Linear(channel -> channel//r).weight.T)
        # w2_ref:  (C, C//r)     == W2    (Linear(channel//r -> channel).weight)
        # s_ref:   (C, 1)        output per-channel scale
        # acc_ref: (C, 1) f32    running spatial sum (VMEM scratch)
        k = pl.program_id(1)

        @pl.when(k == 0)
        def _():
            acc_ref[...] = jnp.zeros_like(acc_ref)

        # Lane-axis (last dim) reduction: cheap XLU codegen.
        acc_ref[...] += jnp.sum(x_ref[...], axis=-1, keepdims=True)

        @pl.when(k == pl.num_programs(1) - 1)
        def _():
            pooled = acc_ref[...] * inv_hw                                # (C, 1)
            # FC1: h[j] = relu(sum_c W1[j, c] * pooled[c]);  w1t[c, j] = W1[j, c]
            h = jnp.sum(w1t_ref[...] * pooled, axis=0, keepdims=True)     # (1, C//r)
            h = jnp.maximum(h, 0.0)
            # FC2: s[c] = sigmoid(sum_j W2[c, j] * h[j])
            s = jnp.sum(w2_ref[...] * h, axis=-1, keepdims=True)          # (C, 1)
            s_ref[...] = jax.nn.sigmoid(s).astype(s_ref.dtype)

    return kernel


# ----------------------------------------------------------------------------
# Kernel 2: out = x * scale (per-channel broadcast over the lane axis)
# ----------------------------------------------------------------------------
def _scale_kernel(x_ref, s_ref, o_ref):
    o_ref[...] = (x_ref[...] * s_ref[...]).astype(o_ref.dtype)


# ----------------------------------------------------------------------------
# Full SE_Module forward
# ----------------------------------------------------------------------------
def se_module_forward(x, w1, w2):
    """x: (B, C, H, W); w1: (C//r, C); w2: (C, C//r)  ->  (B, C, H, W)."""
    b, c, h, w = x.shape
    hw = h * w
    hidden = w1.shape[0]
    t = _pick_spatial_tile(hw)
    n_t = hw // t

    x_flat = x.reshape(b, c, hw)
    x32 = x_flat.astype(jnp.float32)
    w1t = jnp.transpose(w1.astype(jnp.float32))   # (C, C//r)
    w2f = w2.astype(jnp.float32)                  # (C, C//r)

    # --- squeeze + excite -----------------------------------------------------
    scale = pl.pallas_call(
        _make_pool_fc_kernel(hw),
        out_shape=jax.ShapeDtypeStruct((b, c, 1), jnp.float32),
        grid=(b, n_t),
        in_specs=[
            pl.BlockSpec((None, c, t), lambda i, k: (i, 0, k)),
            pl.BlockSpec((c, hidden), lambda i, k: (0, 0)),   # constant -> resident
            pl.BlockSpec((c, hidden), lambda i, k: (0, 0)),   # constant -> resident
        ],
        out_specs=pl.BlockSpec((None, c, 1), lambda i, k: (i, 0, 0)),
        scratch_shapes=[pltpu.VMEM((c, 1), jnp.float32)],
        compiler_params=pltpu.CompilerParams(
            dimension_semantics=("parallel", "arbitrary"),
            vmem_limit_bytes=32 * 1024 * 1024,
        ),
    )(x32, w1t, w2f)

    # --- scale ------------------------------------------------------------------
    out = pl.pallas_call(
        _scale_kernel,
        out_shape=jax.ShapeDtypeStruct((b, c, hw), x.dtype),
        grid=(b, n_t),
        in_specs=[
            pl.BlockSpec((None, c, t), lambda i, k: (i, 0, k)),
            pl.BlockSpec((None, c, 1), lambda i, k: (i, 0, 0)),
        ],
        out_specs=pl.BlockSpec((None, c, t), lambda i, k: (i, 0, k)),
        compiler_params=pltpu.CompilerParams(
            dimension_semantics=("parallel", "parallel"),
            vmem_limit_bytes=32 * 1024 * 1024,
        ),
    )(x_flat, scale.astype(x.dtype))

    return out.reshape(b, c, h, w)


# ----------------------------------------------------------------------------
# Pure-JAX reference (same math, no Pallas) for a correctness cross-check
# ----------------------------------------------------------------------------
def se_module_reference(x, w1, w2):
    y = jnp.mean(x, axis=(2, 3))            # AdaptiveAvgPool2d(1)
    y = jax.nn.relu(y @ w1.T)               # Linear(c, c//r, bias=False) + ReLU
    y = jax.nn.sigmoid(y @ w2.T)            # Linear(c//r, c, bias=False) + Sigmoid
    return x * y[:, :, None, None]


if __name__ == "__main__":
    B, C, H, W = 2, 32, 16, 16
    reduction = 16
    hidden = C // reduction                 # 2

    key = jax.random.PRNGKey(0)
    kx, k1, k2 = jax.random.split(key, 3)
    x = jax.random.normal(kx, (B, C, H, W), jnp.float32)
    w1 = 0.3 * jax.random.normal(k1, (hidden, C), jnp.float32)   # Linear1.weight
    w2 = 0.3 * jax.random.normal(k2, (C, hidden), jnp.float32)   # Linear2.weight

    out = se_module_forward(x, w1, w2)
    out = jax.block_until_ready(out)

    ref = se_module_reference(x, w1, w2)
    assert out.shape == (B, C, H, W)
    err = float(jnp.max(jnp.abs(out - ref)))
    assert err < 5e-3, err

    print("KERNEL_OK")
</pallas_src>

<mosaic_0001>
module attributes {stable_mosaic.version = 11 : i64} {
  func.func @kernel(%arg0: i32, %arg1: i32, %arg2: memref<1x32x256xf32, #tpu.memory_space<vmem>>, %arg3: memref<32x2xf32, #tpu.memory_space<vmem>>, %arg4: memref<32x2xf32, #tpu.memory_space<vmem>>, %arg5: memref<1x32x1xf32, #tpu.memory_space<vmem>>, %arg6: memref<32x1xf32, #tpu.memory_space<vmem>>) attributes {dimension_semantics = [#tpu.dimension_semantics<parallel>, #tpu.dimension_semantics<arbitrary>], iteration_bounds = array<i64: 2, 1>, scalar_prefetch = 0 : i64, scratch_operands = 1 : i64, tpu.core_type = #tpu.core_type<tc>, window_params = [{transform_indices = @transform_0, window_bounds = array<i64: 1, 32, 256>}, {pipeline_mode = #tpu.pipeline_mode<synchronous>, transform_indices = @transform_1, window_bounds = array<i64: 32, 2>}, {pipeline_mode = #tpu.pipeline_mode<synchronous>, transform_indices = @transform_2, window_bounds = array<i64: 32, 2>}, {transform_indices = @transform_3, window_bounds = array<i64: 1, 32, 1>}]} {
    %c0_i32 = arith.constant 0 : i32
    %0 = arith.cmpi eq, %arg1, %c0_i32 : i32
    %1 = arith.extui %0 : i1 to i32
    %c0_i32_0 = arith.constant 0 : i32
    %2 = arith.cmpi ne, %1, %c0_i32_0 : i32
    scf.if %2 {
      %cst_9 = arith.constant 0.000000e+00 : f32
      %13 = vector.broadcast %cst_9 : f32 to vector<32x1xf32>
      %c0_10 = arith.constant 0 : index
      %c0_11 = arith.constant 0 : index
      %14 = vector.load %arg6[%c0_10, %c0_11] : memref<32x1xf32, #tpu.memory_space<vmem>>, vector<32x1xf32>
      tpu.vector_store %arg6[%c0_10, %c0_11], %13 {strides = array<i32>} : memref<32x1xf32, #tpu.memory_space<vmem>>, vector<32x1xf32>,
    } else {
    }
    %c0 = arith.constant 0 : index
    %c0_1 = arith.constant 0 : index
    %3 = vector.load %arg6[%c0, %c0_1] : memref<32x1xf32, #tpu.memory_space<vmem>>, vector<32x1xf32>
    %c0_2 = arith.constant 0 : index
    %c0_3 = arith.constant 0 : index
    %c0_4 = arith.constant 0 : index
    %4 = vector.load %arg2[%c0_2, %c0_3, %c0_4] : memref<1x32x256xf32, #tpu.memory_space<vmem>>, vector<1x32x256xf32>
    %5 = vector.shape_cast %4 : vector<1x32x256xf32> to vector<32x256xf32>
    %cst = arith.constant dense<0.000000e+00> : vector<32xf32>
    %6 = vector.multi_reduction <add>, %5, %cst [1] : vector<32x256xf32> to vector<32xf32>
    %7 = vector.shape_cast %6 : vector<32xf32> to vector<32x1xf32>
    %8 = arith.addf %3, %7 : vector<32x1xf32>
    %c0_5 = arith.constant 0 : index
    %c0_6 = arith.constant 0 : index
    %9 = vector.load %arg6[%c0_5, %c0_6] : memref<32x1xf32, #tpu.memory_space<vmem>>, vector<32x1xf32>
    tpu.vector_store %arg6[%c0_5, %c0_6], %8 {strides = array<i32>} : memref<32x1xf32, #tpu.memory_space<vmem>>, vector<32x1xf32>,
    %c0_i32_7 = arith.constant 0 : i32
    %10 = arith.cmpi eq, %arg1, %c0_i32_7 : i32
    %11 = arith.extui %10 : i1 to i32
    %c0_i32_8 = arith.constant 0 : i32
    %12 = arith.cmpi ne, %11, %c0_i32_8 : i32
    scf.if %12 {
      %c0_9 = arith.constant 0 : index
      %c0_10 = arith.constant 0 : index
      %13 = vector.load %arg6[%c0_9, %c0_10] : memref<32x1xf32, #tpu.memory_space<vmem>>, vector<32x1xf32>
      %cst_11 = arith.constant 3.906250e-03 : f32
      %14 = vector.broadcast %cst_11 : f32 to vector<32x1xf32>
      %15 = arith.mulf %13, %14 : vector<32x1xf32>
      %c0_12 = arith.constant 0 : index
      %c0_13 = arith.constant 0 : index
      %16 = vector.load %arg3[%c0_12, %c0_13] : memref<32x2xf32, #tpu.memory_space<vmem>>, vector<32x2xf32>
      %17 = vector.broadcast %15 : vector<32x1xf32> to vector<32x2xf32>
      %18 = arith.mulf %16, %17 : vector<32x2xf32>
      %cst_14 = arith.constant dense<0.000000e+00> : vector<2xf32>
      %19 = vector.multi_reduction <add>, %18, %cst_14 [0] : vector<32x2xf32> to vector<2xf32>
      %20 = vector.shape_cast %19 : vector<2xf32> to vector<1x2xf32>
      %cst_15 = arith.constant 0.000000e+00 : f32
      %21 = vector.broadcast %cst_15 : f32 to vector<1x2xf32>
      %22 = arith.maximumf %20, %21 : vector<1x2xf32>
      %c0_16 = arith.constant 0 : index
      %c0_17 = arith.constant 0 : index
      %23 = vector.load %arg4[%c0_16, %c0_17] : memref<32x2xf32, #tpu.memory_space<vmem>>, vector<32x2xf32>
      %24 = vector.broadcast %22 : vector<1x2xf32> to vector<32x2xf32>
      %25 = arith.mulf %23, %24 : vector<32x2xf32>
      %cst_18 = arith.constant dense<0.000000e+00> : vector<32xf32>
      %26 = vector.multi_reduction <add>, %25, %cst_18 [1] : vector<32x2xf32> to vector<32xf32>
      %27 = vector.shape_cast %26 : vector<32xf32> to vector<32x1xf32>
      %28 = arith.negf %27 : vector<32x1xf32>
      %29 = math.exp %28 : vector<32x1xf32>
      %cst_19 = arith.constant 1.000000e+00 : f32
      %30 = vector.broadcast %cst_19 : f32 to vector<32x1xf32>
      %31 = arith.addf %30, %29 : vector<32x1xf32>
      %32 = arith.divf %30, %31 : vector<32x1xf32>
      %c0_20 = arith.constant 0 : index
      %c0_21 = arith.constant 0 : index
      %c0_22 = arith.constant 0 : index
      %33 = vector.load %arg5[%c0_20, %c0_21, %c0_22] : memref<1x32x1xf32, #tpu.memory_space<vmem>>, vector<1x32x1xf32>
      %34 = vector.shape_cast %33 : vector<1x32x1xf32> to vector<32x1xf32>
      %35 = vector.shape_cast %32 : vector<32x1xf32> to vector<1x32x1xf32>
      tpu.vector_store %arg5[%c0_20, %c0_21, %c0_22], %35 {strides = array<i32>} : memref<1x32x1xf32, #tpu.memory_space<vmem>>, vector<1x32x1xf32>,
    } else {
    }
    return
  }
  func.func @transform_0(%arg0: i32, %arg1: i32) -> (i32, i32, i32) {
    %c0_i32 = arith.constant 0 : i32
    %c0_i32_0 = arith.constant 0 : i32
    return %arg0, %c0_i32, %arg1 : i32, i32, i32
  }
  func.func @transform_1(%arg0: i32, %arg1: i32) -> (i32, i32) {
    %c0_i32 = arith.constant 0 : i32
    %c0_i32_0 = arith.constant 0 : i32
    %c0_i32_1 = arith.constant 0 : i32
    return %c0_i32, %c0_i32_0 : i32, i32
  }
  func.func @transform_2(%arg0: i32, %arg1: i32) -> (i32, i32) {
    %c0_i32 = arith.constant 0 : i32
    %c0_i32_0 = arith.constant 0 : i32
    %c0_i32_1 = arith.constant 0 : i32
    return %c0_i32, %c0_i32_0 : i32, i32
  }
  func.func @transform_3(%arg0: i32, %arg1: i32) -> (i32, i32, i32) {
    %c0_i32 = arith.constant 0 : i32
    %c0_i32_0 = arith.constant 0 : i32
    %c0_i32_1 = arith.constant 0 : i32
    return %arg0, %c0_i32, %c0_i32_0 : i32, i32, i32
  }
}

</mosaic_0001>

<bundles_post_ra>
// kernel: tpu_custom_call.1
= control target key start
LH: loop header
LB: loop body
LE: loop exit
PB: predicated region body
PF: predicated region fallthrough
CT: control target
= control target key end

     0   :  { %8 = vsyncpa [#allocation4], 0  ;;  %s825_s0 = inlined_call_operand.hbm [shape: f32[2,32,256], index: 0, kind: input, shape index: {}]   ;;  %s826_s1 = inlined_call_operand.vmem [shape: f32[32,2], index: 1, kind: input, shape index: {}]   ;;  %s827_s2 = inlined_call_operand.vmem [shape: f32[32,2], index: 2, kind: input, shape index: {}]   ;;  %s828_s3 = inlined_call_operand.vmem [shape: f32[2,32,1], index: 3, kind: output, shape index: {}]  }
   0x1   :  { %10 = vsyncpa [#allocation4 + $0x1], 0  ;;  %s687_s12 = smov 0   ;;  %s689_s13 = smov 0  }
   0x2   :  { %s691_s14 = smov 0   ;;  %s693_s15 = smov 0  }
   0x3   :  { %s695_s16 = smov 0   ;;  %s697_s17 = smov 0  }
   0x4 LB: > { %s484_s18 = sadd.s32 4294967295, %s661_s17   ;;  %s28_s19 = sadd.s32 1, %s657_s16  ;;  %s661_s17 = sphi %s697_s17, %s16_s17   ;;  %s657_s16 = sphi %s695_s16, %s835_s16   ;;  %s653_s15 = sphi %s693_s15, %s834_s15   ;;  %s649_s14 = sphi %s691_s14, %s833_s14   ;;  %s645_s13 = sphi %s689_s13, %s832_s13   ;;  %s641_s12 = sphi %s687_s12, %s831_s12  }
   0x5   : > { %p30_p0 = scmp.ge.s32.totalorder %s28_s19, 2  ;;  %s37_s20 = sadd.s32 1, %s649_s14 }
   0x6   : > { %p44_p1 = scmp.ne.s32.totalorder %s649_s14, %s645_s13  ;;  %p45_p2 = scmp.eq.s32.totalorder %s661_s17, 0 }
   0x7   : > { %s837_s19 = smov (%p30_p0, %s28_s19), 0  ;;  %p50_p4 = scmp.ne.s32.totalorder %s645_s13, %s641_s12 }
   0x8   : > { %p723_p3 = por %p45_p2, %p44_p1  ;;  %s32_s22 = ssub.s32 %s657_s16, %s837_s19 }
   0x9   : > { %p51_p5 = scmp.eq.s32.totalorder %s484_s18, 0  ;;  %p35_p6 = scmp.eq.s32.totalorder %s32_s22, 0 }
   0xa   : > { %p509_p8 = scmp.lt.s32.totalorder %s661_s17, 2  ;;  %s148_s25 = sand.u32 1, %s649_s14  }
   0xb   : > { %p730_p7 = por %p51_p5, %p50_p4  ;;  %s501_s26 = sshll.u32 %s657_s16, 6 }
   0xc   : > { %s736_s24 = scalar_select %p35_p6, %s649_s14, %s37_s20  }
   0xd   : > { %s488_s27 = sshll.u32 %s148_s25, 6  ;;  %s159_s30 = scalar_lea.hbm %s825_s0, %s501_s26 }
   0xe   : > { %s160_s4 = sshll.u32 %s159_s30, 4  ;;  %s152_s5 = scalar_lea.vmem [#allocation3], %s488_s27  ;;  %s161_s4 = int_to_ptr.hbm [resolvable:$true] %s160_s4 }
   0xf   : > { %s162_s6 = sshll.u32 %s152_s5, 4  ;;  %p506_p9 = pnand %p509_p8, %p723_p3  ;;  %s163_s6 = int_to_ptr.vmem [resolvable:$true] %s162_s6 }
  0x10   : > { %p491_p10 = scmp.ge.s32.totalorder %s661_s17, 1  ;;  %p170_p11 = scmp.lt.s32.totalorder %s661_s17, 3 }
  0x11   : > { %s149_s7 = scalar_lea.sflag [#allocation4], %s148_s25  ;;  %s663_s8 = smov 256  }
  0x12   : > { %s664_s9 = smov 16   ;;  %p171_p12 = pnand %p491_p10, %p170_p11 }
  0x13   : > { %508 = dma.hbm_to_vmem [thread:$0]  (!%p506_p9), %s161_s4, 1024, %s163_s6, %s149_s7, %s663_s8, %s663_s8, %s664_s9  }
  0x14   : > { %174 = sbr.rel (%p171_p12) target bundleno = 458 (0x1ca), region = 32  ;;  %s176_s10 = sand.u32 (!%p171_p12), 1, %s645_s13  }
  0x15   : > { %s492_s11 = sshll.u32 (!%p171_p12), %s176_s10, 6  ;;  %s177_s12 = scalar_lea.sflag (!%p171_p12), [#allocation4], %s176_s10 }
  0x16   : > { %s180_s18 = scalar_lea.vmem (!%p171_p12), [#allocation3], %s492_s11 }
  0x19   : > { %636 = dma.done.wait (%p730_p7), %s177_s12, 1024  }
  0x1a   : > { %638 = vsyncadd (%p730_p7), %s177_s12, 4294966272  ;;  %vm214_vm0 = vcmask 7168   ;;  %v665_v0 = vmov 0.0   ;;  %v227_v1 = vld [vmem:[%s180_s18 + $0x20] sm:$0xff]  ;;  %v228_v2 = vld [vmem:[%s180_s18 + $0x28] sm:$0xff]  ;;  %v666_v13 = vmov 0  }
  0x1b   : > { %217 = vst.msk [vmem:[#allocation2 + $0x10] sm:$0xff] %vm214_vm0, %v665_v0  ;;  %v237_v3 = vadd.f32 %v228_v2, %v227_v1  ;;  %v223_v4 = vld [vmem:[%s180_s18] sm:$0xff]  ;;  %v224_v5 = vld [vmem:[%s180_s18 + $0x8] sm:$0xff]  ;;  %v229_v7 = vld [vmem:[%s180_s18 + $0x30] sm:$0xff]  ;;  %563 = vset.pattern.permute.xlu0 %v666_v13  ;;  %564 = vset.pattern.permute.xlu1 %v666_v13  ;;  %vm291_vm1 = vcmask 15360   ;;  %p205_p13 = scmp.lt.s32.totalorder %s653_s15, 1 }
  0x1c   : > { %215 = vst.msk [vmem:[#allocation2] sm:$0xff] %vm214_vm0, %v665_v0  ;;  %v231_v6 = vadd.f32 %v224_v5, %v223_v4  ;;  %v230_v8 = vld [vmem:[%s180_s18 + $0x38] sm:$0xff]  ;;  %v225_v9 = vld [vmem:[%s180_s18 + $0x10] sm:$0xff]  ;;  %562 = vset.pattern.permute.xlu2 %v666_v13  ;;  %v263_v35 = vld [vmem:[%s826_s1] sm:$0xff] }
  0x1d   : > { %216 = vst.msk [vmem:[#allocation2 + $0x8] sm:$0xff] %vm214_vm0, %v665_v0  ;;  %238 = vadd.xlane.f32.xlu1 %v237_v3  ;;  %v226_v10 = vld [vmem:[%s180_s18 + $0x18] sm:$0xff]  ;;  %v240_v11 = vadd.f32 %v230_v8, %v229_v7  ;;  %v264_v36 = vld [vmem:[%s826_s1 + $0x8] sm:$0xff]  ;;  %v265_v38 = vld [vmem:[%s826_s1 + $0x10] sm:$0xff]  ;;  %s839_s15 = smov (!%p205_p13, %s653_s15), 1 }
  0x1e   : > { %218 = vst.msk [vmem:[#allocation2 + $0x18] sm:$0xff] %vm214_vm0, %v665_v0  ;;  %232 = vadd.xlane.f32.xlu0 %v231_v6  ;;  %v234_v12 = vadd.f32 %v226_v10, %v225_v9  ;;  %v266_v45 = vld [vmem:[%s826_s1 + $0x18] sm:$0xff]  ;;  %v308_v59 = vld [vmem:[%s827_s2 + $0x10] sm:$0xff]  ;;  %v307_v60 = vld [vmem:[%s827_s2 + $0x8] sm:$0xff]  ;;  %s502_s10 = sshll.u32 %s839_s15, 5 }
  0x1f   : > { %v306_v61 = vld [vmem:[%s827_s2] sm:$0xff]  ;;  %v309_v5 = vld [vmem:[%s827_s2 + $0x18] sm:$0xff]  ;;  %s797_s18 = scalar_lea.vmem %s828_s3, %s502_s10 }
  0x22   : > { %v221_v14 = vld [vmem:[#allocation2 + $0x10] sm:$0xff] }
  0x23   : > { %v219_v15 = vld [vmem:[#allocation2] sm:$0xff] }
  0x24   : > { %v220_v21 = vld [vmem:[#allocation2 + $0x8] sm:$0xff] }
  0x25   : > { %241 = vadd.xlane.f32.xlu1 %v240_v11  ;;  %v222_v20 = vld [vmem:[#allocation2 + $0x18] sm:$0xff] }
  0x26   : > { %235 = vadd.xlane.f32.xlu0 %v234_v12 }
  0x90   : > { %v239_v16 = vpop.xlane.xlu1 %238 }
  0x91   : > { %v245_v17 = vadd.f32 %v239_v16, %v221_v14  ;;  %v233_v18 = vpop.xlane.xlu0 %232 }
  0x92   : > { %v243_v19 = vadd.f32 %v233_v18, %v219_v15 }
  0x93   : > { %250 = vst.msk [vmem:[#allocation2 + $0x10] sm:$0xff] %vm214_vm0, %v245_v17 }
  0x94   : > { %248 = vst.msk [vmem:[#allocation2] sm:$0xff] %vm214_vm0, %v243_v19 }
  0x98   : > { %v242_v22 = vpop.xlane.xlu1 %241 }
  0x99   : > { %v246_v23 = vadd.f32 %v242_v22, %v222_v20  ;;  %v236_v24 = vpop.xlane.xlu0 %235 }
  0x9a   : > { %v257_v25 = vld [vmem:[#allocation2 + $0x10] sm:$0xff]  ;;  %v244_v26 = vadd.f32 %v236_v24, %v220_v21 }
  0x9b   : > { %251 = vst.msk [vmem:[#allocation2 + $0x18] sm:$0xff] %vm214_vm0, %v246_v23  ;;  %v261_v27 = vmul.f32 0.00390625, %v257_v25  ;;  %v255_v28 = vld [vmem:[#allocation2] sm:$0xff] }
  0x9c   : > { %249 = vst.msk [vmem:[#allocation2 + $0x8] sm:$0xff] %vm214_vm0, %v244_v26  ;;  %v259_v29 = vmul.f32 0.00390625, %v255_v28 }
  0x9d   : > { %279 = vperm.xlu0 %563, %v261_v27  }
  0x9e   : > { %269 = vperm.xlu2 %562, %v259_v29  }
  0xa2   : > { %v258_v30 = vld [vmem:[#allocation2 + $0x18] sm:$0xff] }
  0xa3   : > { %v262_v31 = vmul.f32 0.00390625, %v258_v30  ;;  %v256_v32 = vld [vmem:[#allocation2 + $0x8] sm:$0xff] }
  0xa4   : > { %v260_v33 = vmul.f32 0.00390625, %v256_v32 }
  0xa5   : > { %284 = vperm.xlu1 %564, %v262_v31  }
  0xa6   : > { %274 = vperm.xlu2 %562, %v260_v33  }
  0xf8   : > { %v270_v34 = vpop.permute.xlu2 %269 }
  0xf9   : > { %v287_v40 = vmul.f32 %v270_v34, %v263_v35 }
  0xfb   : > { %v292_v43 = vsel %vm291_vm1, %v287_v40, 0.0 }
 0x100   : > { %v275_v37 = vpop.permute.xlu2 %274 }
 0x101   : > { %v288_v41 = vmul.f32 %v275_v37, %v264_v36 }
 0x103   : > { %v293_v44 = vsel %vm291_vm1, %v288_v41, 0.0 }
 0x104   : > { %v294_v47 = vadd.f32 %v293_v44, %v292_v43 }
 0x10f   : > { %v280_v39 = vpop.permute.xlu0 %279 }
 0x110   : > { %v289_v42 = vmul.f32 %v280_v39, %v265_v38 }
 0x112   : > { %v295_v46 = vsel %vm291_vm1, %v289_v42, 0.0 }
 0x113   : > { %v296_v50 = vadd.f32 %v295_v46, %v294_v47 }
 0x117   : > { %v285_v48 = vpop.permute.xlu1 %284 }
 0x118   : > { %v290_v49 = vmul.f32 %v285_v48, %v266_v45 }
 0x11a   : > { %v297_v51 = vsel %vm291_vm1, %v290_v49, 0.0 }
 0x11b   : > { %v298_v52 = vadd.f32 %v297_v51, %v296_v50 }
 0x11d   : > { %v299_v53 = vrot.slane %v298_v52, 4 }
 0x11f   : > { %v300_v54 = vadd.f32 %v299_v53, %v298_v52 }
 0x121   : > { %v301_v55 = vrot.slane %v300_v54, 2 }
 0x123   : > { %v302_v56 = vadd.f32 %v301_v55, %v300_v54 }
 0x125   : > { %v303_v57 = vrot.slane %v302_v56, 1 }
 0x127   : > { %v304_v58 = vadd.f32 %v303_v57, %v302_v56 }
 0x129   : > { %v305_v62 = vmax.f32 %v304_v58, 0.0 }
 0x12b   : > { %v312_v63 = vmul.f32 %v308_v59, %v305_v62  ;;  %v311_v0 = vmul.f32 %v307_v60, %v305_v62  ;;  %v310_v1 = vmul.f32 %v306_v61, %v305_v62  ;;  %v313_v6 = vmul.f32 %v309_v5, %v305_v62 }
 0x12d   : > { %v320_v2 = vsel %vm291_vm1, %v312_v63, 0.0  ;;  %v317_v3 = vsel %vm291_vm1, %v311_v0, 0.0  ;;  %v314_v4 = vsel %vm291_vm1, %v310_v1, 0.0  ;;  %v323_v7 = vsel %vm291_vm1, %v313_v6, 0.0 }
 0x12e   : > { %321 = vadd.xlane.f32.xlu0 %v320_v2  ;;  %318 = vadd.xlane.f32.xlu1 %v317_v3 }
 0x12f   : > { %315 = vadd.xlane.f32.xlu2 %v314_v4 }
 0x137   : > { %324 = vadd.xlane.f32.xlu2 %v323_v7 }
 0x1a1   : > { %v322_v8 = vpop.xlane.xlu0 %321  ;;  %v319_v9 = vpop.xlane.xlu1 %318 }
 0x1a2   : > { %v497_v10 = vmul.f32 -1.442695, %v322_v8  ;;  %v496_v11 = vmul.f32 -1.442695, %v319_v9  ;;  %v316_v12 = vpop.xlane.xlu2 %315 }
 0x1a3   : > { %v495_v13 = vmul.f32 -1.442695, %v316_v12 }
 0x1a4   : > { %565 = vpow2.f32 %v497_v10 }
 0x1a5   : > { %567 = vpow2.f32 %v496_v11 }
 0x1a6   : > { %569 = vpow2.f32 %v495_v13 }
 0x1aa   : > { %v566_v14 = vpop.eup %565  ;;  %v325_v15 = vpop.xlane.xlu2 %324 }
 0x1ab   : > { %v568_v16 = vpop.eup %567  ;;  %v340_v17 = vadd.f32 1.0, %v566_v14  ;;  %v498_v18 = vmul.f32 -1.442695, %v325_v15 }
 0x1ac   : > { %v570_v19 = vpop.eup %569  ;;  %v339_v20 = vadd.f32 1.0, %v568_v16 }
 0x1ad   : > { %571 = vrcp.f32 %v340_v17  ;;  %v338_v21 = vadd.f32 1.0, %v570_v19  ;;  %v381_v28 = vand.u32 2147483647, %v340_v17  ;;  %v383_v31 = vand.u32 2147483648, %v340_v17 }
 0x1ae   : > { %573 = vrcp.f32 %v339_v20  ;;  %v368_v33 = vand.u32 2147483648, %v339_v20  ;;  %vm377_vm3 = vweird.f32 %v340_v17  ;;  %v366_v37 = vand.u32 2147483647, %v339_v20 }
 0x1af   : > { %575 = vpow2.f32 %v498_v18  ;;  %vm382_vm5 = vcmp.eq.f32.partialorder %v381_v28, 8.507059e+37  ;;  %vm362_vm6 = vweird.f32 %v339_v20  ;;  %v384_v40 = vor.u32 1.1754944e-38, %v383_v31 }
 0x1b0   : > { %577 = vrcp.f32 %v338_v21  ;;  %v369_v42 = vor.u32 1.1754944e-38, %v368_v33  ;;  %v353_v43 = vand.u32 2147483648, %v338_v21  ;;  %v351_v46 = vand.u32 2147483647, %v338_v21 }
 0x1b1   : > { %vm367_vm10 = vcmp.eq.f32.partialorder %v366_v37, 8.507059e+37  ;;  %vm347_vm11 = vweird.f32 %v338_v21 }
 0x1b2   : > { %v354_v52 = vor.u32 1.1754944e-38, %v353_v43  ;;  %vm352_vm13 = vcmp.eq.f32.partialorder %v351_v46, 8.507059e+37 }
 0x1b3   : > { %v572_v22 = vpop.eup %571 }
 0x1b4   : > { %v574_v23 = vpop.eup %573  ;;  %v373_v24 = vmul.f32 %v572_v22, %v340_v17  ;;  %vm378_vm2 = vweird.f32 %v572_v22 }
 0x1b5   : > { %v576_v25 = vpop.eup %575  ;;  %v358_v26 = vmul.f32 %v574_v23, %v339_v20  ;;  %vm363_vm4 = vweird.f32 %v574_v23  ;;  %vm379_vm7 = vmor %vm377_vm3, %vm378_vm2 }
 0x1b6   : > { %v374_v27 = vsub.f32 1.0, %v373_v24  ;;  %v341_v29 = vadd.f32 1.0, %v576_v25  ;;  %v578_v30 = vpop.eup %577  ;;  %vm364_vm8 = vmor %vm362_vm6, %vm363_vm4 }
 0x1b7   : > { %v359_v32 = vsub.f32 1.0, %v358_v26  ;;  %v343_v35 = vmul.f32 %v578_v30, %v338_v21  ;;  %vm348_vm9 = vweird.f32 %v578_v30 }
 0x1b8   : > { %v375_v34 = vmul.f32 %v572_v22, %v374_v27  ;;  %579 = vrcp.f32 %v341_v29  ;;  %vm349_vm12 = vmor %vm347_vm11, %vm348_vm9  ;;  %v398_v57 = vand.u32 2147483648, %v341_v29  ;;  %v396_v59 = vand.u32 2147483647, %v341_v29 }
 0x1b9   : > { %v360_v36 = vmul.f32 %v574_v23, %v359_v32  ;;  %v344_v39 = vsub.f32 1.0, %v343_v35  ;;  %vm392_vm15 = vweird.f32 %v341_v29 }
 0x1ba   : > { %v376_v38 = vadd.f32 %v572_v22, %v375_v34  ;;  %v399_v61 = vor.u32 1.1754944e-38, %v398_v57  ;;  %vm397_vm2 = vcmp.eq.f32.partialorder %v396_v59, 8.507059e+37 }
 0x1bb   : > { %v361_v41 = vadd.f32 %v574_v23, %v360_v36  ;;  %v345_v45 = vmul.f32 %v578_v30, %v344_v39 }
 0x1bc   : > { %v380_v44 = vsel %vm379_vm7, %v572_v22, %v376_v38 }
 0x1bd   : > { %v385_v47 = vsel %vm382_vm5, %v384_v40, %v380_v44  ;;  %v365_v48 = vsel %vm364_vm8, %v574_v23, %v361_v41  ;;  %v346_v51 = vadd.f32 %v578_v30, %v345_v45 }
 0x1be   : > { %v580_v49 = vpop.eup %579  ;;  %404 = vst.msk [vmem:[%s797_s18 + $0x10] sm:$0xff] %vm214_vm0, %v385_v47  ;;  %v370_v50 = vsel %vm367_vm10, %v369_v42, %v365_v48 }
 0x1bf   : > { %403 = vst.msk [vmem:[%s797_s18 + $0x8] sm:$0xff] %vm214_vm0, %v370_v50  ;;  %v388_v53 = vmul.f32 %v580_v49, %v341_v29  ;;  %v350_v54 = vsel %vm349_vm12, %v578_v30, %v346_v51  ;;  %vm393_vm14 = vweird.f32 %v580_v49 }
 0x1c0   : > { %v355_v55 = vsel %vm352_vm13, %v354_v52, %v350_v54  ;;  %vm394_vm1 = vmor %vm392_vm15, %vm393_vm14 }
 0x1c1   : > { %v389_v56 = vsub.f32 1.0, %v388_v53  ;;  %402 = vst.msk [vmem:[%s797_s18] sm:$0xff] %vm214_vm0, %v355_v55 }
 0x1c3   : > { %v390_v58 = vmul.f32 %v580_v49, %v389_v56 }
 0x1c5   : > { %v391_v60 = vadd.f32 %v580_v49, %v390_v58 }
 0x1c7   : > { %v395_v62 = vsel %vm394_vm1, %v580_v49, %v391_v60 }
 0x1c8   : > { %v400_v63 = vsel %vm397_vm2, %v399_v61, %v395_v62 }
 0x1c9   : > { %405 = vst.msk [vmem:[%s797_s18 + $0x18] sm:$0xff] %vm214_vm0, %v400_v63 }
 0x1ca PF: > { %s16_s17 = sadd.s32 1, %s661_s17   ;;  %s831_s12 = smov %s645_s13 }
 0x1cb   : > { %p13_p0 = scmp.ge.s32.totalorder %s16_s17, 4   ;;  %s832_s13 = smov %s649_s14 }
 0x1cc   : > { %s833_s14 = smov %s736_s24  ;;  %s834_s15 = smov %s657_s16 }
 0x1cd   : > { %s835_s16 = smov %s837_s19  ;;  %15 = sbr.rel (!%p13_p0) target bundleno = 4 (0x4), region = 80 }
 0x1d2   :  { %427 = vsyncpa [#allocation4], 1 }
 0x1d3   :  { %429 = vsyncpa [#allocation4 + $0x1], 1 }

</bundles_post_ra>
